<compile_context>
chip_gen: v7x
topology: tpu7x:2x2x1
jax: 0.10.0
libtpu: 0.0.40
codegen_flags: <defaults>
</compile_context>

<pallas_src>
import functools

import numpy as np
import jax
import jax.numpy as jnp
from jax import lax
from jax.experimental import pallas as pl
from jax.experimental.pallas import tpu as pltpu

# ----------------------------- model dims (synthetic, deterministic) ---------
BATCH = 2
STATE_DIM = 16
HIDDEN = 32
DIM_ACTION = 8
Q_PAD = 128          # lane-dense padded action width (full 128-lane stores)
NEG_PAD = -1e30      # bias padding so padded columns never win an argmax
EPSILON = 0.5
MAX_TILE_B = 512     # batch tile once B grows; tiny weights stay resident in VMEM


def _round_up(x, m):
    return ((x + m - 1) // m) * m


# ----------------------------- Pallas kernel ---------------------------------
def qnet_kernel(x_ref, w1_ref, b1_ref, w2_ref, b2_ref, w3_ref, b3_ref, q_ref):
    """3-layer MLP (Linear+ReLU, Linear+ReLU, Linear) -> lane-dense padded Q block."""
    x = x_ref[...]

    h1 = jnp.dot(x, w1_ref[...], preferred_element_type=jnp.float32) + b1_ref[...]
    h1 = jnp.maximum(h1, 0.0)

    h2 = jnp.dot(h1, w2_ref[...], preferred_element_type=jnp.float32) + b2_ref[...]
    h2 = jnp.maximum(h2, 0.0)

    q_ref[...] = jnp.dot(h2, w3_ref[...], preferred_element_type=jnp.float32) + b3_ref[...]


def pad_params(params):
    """One-time padding of the output layer to 128 lanes (zeros in W, -1e30 in b)."""
    w1, b1, w2, b2, w3, b3 = params
    w3p = jnp.pad(w3, ((0, 0), (0, Q_PAD - DIM_ACTION)))
    b3p = jnp.pad(b3, ((0, 0), (0, Q_PAD - DIM_ACTION)), constant_values=NEG_PAD)
    return (w1, b1, w2, b2, w3p, b3p)


def _qnet_forward_padded(state, padded_params):
    """Padded Q slab (B_pad, Q_PAD) f32; padded action columns hold -1e30."""
    w1, b1, w2, b2, w3p, b3p = padded_params
    B = state.shape[0]
    tb = min(MAX_TILE_B, _round_up(B, 8))      # sublane-aligned batch tile
    B_pad = _round_up(B, tb)
    if B_pad != B:
        state = jnp.pad(state, ((0, B_pad - B), (0, 0)))

    q_pad = pl.pallas_call(
        qnet_kernel,
        out_shape=jax.ShapeDtypeStruct((B_pad, Q_PAD), jnp.float32),
        grid=(B_pad // tb,),
        in_specs=[
            pl.BlockSpec((tb, STATE_DIM), lambda i: (i, 0)),
            pl.BlockSpec((STATE_DIM, HIDDEN), lambda i: (0, 0)),
            pl.BlockSpec((1, HIDDEN), lambda i: (0, 0)),
            pl.BlockSpec((HIDDEN, HIDDEN), lambda i: (0, 0)),
            pl.BlockSpec((1, HIDDEN), lambda i: (0, 0)),
            pl.BlockSpec((HIDDEN, Q_PAD), lambda i: (0, 0)),
            pl.BlockSpec((1, Q_PAD), lambda i: (0, 0)),
        ],
        out_specs=pl.BlockSpec((tb, Q_PAD), lambda i: (i, 0)),
        compiler_params=pltpu.CompilerParams(
            dimension_semantics=("parallel",)),
    )(state, w1, b1, w2, b2, w3p, b3p)
    return q_pad


@jax.jit
def qnet_forward(state, padded_params):
    """Q-values (B, DIM_ACTION) f32."""
    q_pad = _qnet_forward_padded(state, padded_params)
    return q_pad[:state.shape[0], :DIM_ACTION]


@jax.jit
def greedy_actions(state, padded_params):
    """argmax over the action dim (first max index, matching torch.max).

    Argmax runs on the lane-dense padded slab (pad columns are -1e30 so they
    never win); only the resulting indices are sliced to the real batch."""
    q_pad = _qnet_forward_padded(state, padded_params)
    return jnp.argmax(q_pad, axis=1).astype(jnp.int32)[:state.shape[0]]


# ----------------------------- DDQN-style wrapper (all on device) -------------
@functools.partial(jax.jit, static_argnames=("eval_tag",))
def ddqn_act(rng_key, state, padded_params, epsilon, eval_tag=True):
    """Mirrors DDQN.forward for a single state; epsilon-greedy fully on device.

    NOTE: the original code exploits (greedy) with prob <= epsilon and explores
    otherwise; that (unusual) convention is preserved.  The Q-network is only
    evaluated on the greedy branch (lax.cond skips it when exploring)."""
    k_branch, k_rand = jax.random.split(rng_key)

    def greedy(_):
        q_pad = _qnet_forward_padded(state, padded_params)
        return jnp.argmax(q_pad[0], axis=-1).astype(jnp.int32)

    def explore(_):
        return jax.random.randint(k_rand, (), 0, DIM_ACTION, dtype=jnp.int32)

    if not eval_tag:
        return greedy(None)
    exploit = jax.random.uniform(k_branch) <= epsilon
    return lax.cond(exploit, greedy, explore, operand=None)


# ----------------------------- deterministic params ---------------------------
def init_params(key):
    ks = jax.random.split(key, 6)
    scale1 = 1.0 / np.sqrt(STATE_DIM)
    scale2 = 1.0 / np.sqrt(HIDDEN)
    w1 = jax.random.uniform(ks[0], (STATE_DIM, HIDDEN), jnp.float32, -scale1, scale1)
    b1 = jax.random.uniform(ks[1], (1, HIDDEN), jnp.float32, -scale1, scale1)
    w2 = jax.random.uniform(ks[2], (HIDDEN, HIDDEN), jnp.float32, -scale2, scale2)
    b2 = jax.random.uniform(ks[3], (1, HIDDEN), jnp.float32, -scale2, scale2)
    w3 = jax.random.uniform(ks[4], (HIDDEN, DIM_ACTION), jnp.float32, -scale2, scale2)
    b3 = jax.random.uniform(ks[5], (1, DIM_ACTION), jnp.float32, -scale2, scale2)
    return (w1, b1, w2, b2, w3, b3)


if __name__ == "__main__":
    key = jax.random.PRNGKey(0)
    pkey, skey, akey = jax.random.split(key, 3)
    params = init_params(pkey)
    pparams = pad_params(params)          # pad output layer once, reuse every call

    # small deterministic batch of states (B, state_dim)
    state = jax.random.normal(skey, (BATCH, STATE_DIM), jnp.float32)

    q_vals = qnet_forward(state, pparams)
    acts = greedy_actions(state, pparams)
    jax.block_until_ready((q_vals, acts))

    # reference check in plain JAX
    w1, b1, w2, b2, w3, b3 = params
    h1 = jnp.maximum(state @ w1 + b1, 0.0)
    h2 = jnp.maximum(h1 @ w2 + b2, 0.0)
    q_ref = h2 @ w3 + b3
    assert np.allclose(np.asarray(q_vals), np.asarray(q_ref), atol=1e-5)
    assert np.array_equal(np.asarray(acts), np.argmax(np.asarray(q_ref), axis=1))

    # on-device epsilon-greedy decision on a single state (like DDQN.forward + .item())
    action = ddqn_act(akey, state[:1], pparams, jnp.float32(EPSILON), eval_tag=True)
    jax.block_until_ready(action)
    assert 0 <= int(action) < DIM_ACTION

    # pure-greedy path (eval_tag=False)
    action_g = ddqn_act(akey, state[:1], pparams, jnp.float32(EPSILON), eval_tag=False)
    jax.block_until_ready(action_g)
    assert int(action_g) == int(np.argmax(np.asarray(q_ref)[0]))

    print("KERNEL_OK")
</pallas_src>

<mosaic_0001>
module attributes {stable_mosaic.version = 11 : i64} {
  func.func @qnet_kernel(%arg0: i32, %arg1: memref<8x16xf32, #tpu.memory_space<vmem>>, %arg2: memref<16x32xf32, #tpu.memory_space<vmem>>, %arg3: memref<1x32xf32, #tpu.memory_space<vmem>>, %arg4: memref<32x32xf32, #tpu.memory_space<vmem>>, %arg5: memref<1x32xf32, #tpu.memory_space<vmem>>, %arg6: memref<32x128xf32, #tpu.memory_space<vmem>>, %arg7: memref<1x128xf32, #tpu.memory_space<vmem>>, %arg8: memref<8x128xf32, #tpu.memory_space<vmem>>) attributes {dimension_semantics = [#tpu.dimension_semantics<parallel>], iteration_bounds = array<i64: 1>, scalar_prefetch = 0 : i64, scratch_operands = 0 : i64, tpu.core_type = #tpu.core_type<tc>, window_params = [{transform_indices = @transform_0, window_bounds = array<i64: 8, 16>}, {pipeline_mode = #tpu.pipeline_mode<synchronous>, transform_indices = @transform_1, window_bounds = array<i64: 16, 32>}, {pipeline_mode = #tpu.pipeline_mode<synchronous>, transform_indices = @transform_2, window_bounds = array<i64: 1, 32>}, {pipeline_mode = #tpu.pipeline_mode<synchronous>, transform_indices = @transform_3, window_bounds = array<i64: 32, 32>}, {pipeline_mode = #tpu.pipeline_mode<synchronous>, transform_indices = @transform_4, window_bounds = array<i64: 1, 32>}, {pipeline_mode = #tpu.pipeline_mode<synchronous>, transform_indices = @transform_5, window_bounds = array<i64: 32, 128>}, {pipeline_mode = #tpu.pipeline_mode<synchronous>, transform_indices = @transform_6, window_bounds = array<i64: 1, 128>}, {transform_indices = @transform_7, window_bounds = array<i64: 8, 128>}]} {
    %c0 = arith.constant 0 : index
    %c0_0 = arith.constant 0 : index
    %0 = vector.load %arg1[%c0, %c0_0] : memref<8x16xf32, #tpu.memory_space<vmem>>, vector<8x16xf32>
    %c0_1 = arith.constant 0 : index
    %c0_2 = arith.constant 0 : index
    %1 = vector.load %arg2[%c0_1, %c0_2] : memref<16x32xf32, #tpu.memory_space<vmem>>, vector<16x32xf32>
    %cst = arith.constant dense<0.000000e+00> : vector<8x32xf32>
    %2 = tpu.matmul %0, %1, %cst {dimension_numbers = #tpu.dot_dimension_numbers<[1], [0], [0], [1], [0, 0, 1, 1], [], []>} : vector<8x16xf32>, vector<16x32xf32>, vector<8x32xf32> -> vector<8x32xf32>
    %c0_3 = arith.constant 0 : index
    %c0_4 = arith.constant 0 : index
    %3 = vector.load %arg3[%c0_3, %c0_4] : memref<1x32xf32, #tpu.memory_space<vmem>>, vector<1x32xf32>
    %4 = vector.broadcast %3 : vector<1x32xf32> to vector<8x32xf32>
    %5 = arith.addf %2, %4 : vector<8x32xf32>
    %cst_5 = arith.constant 0.000000e+00 : f32
    %6 = vector.broadcast %cst_5 : f32 to vector<8x32xf32>
    %7 = arith.maximumf %5, %6 : vector<8x32xf32>
    %c0_6 = arith.constant 0 : index
    %c0_7 = arith.constant 0 : index
    %8 = vector.load %arg4[%c0_6, %c0_7] : memref<32x32xf32, #tpu.memory_space<vmem>>, vector<32x32xf32>
    %cst_8 = arith.constant dense<0.000000e+00> : vector<8x32xf32>
    %9 = tpu.matmul %7, %8, %cst_8 {dimension_numbers = #tpu.dot_dimension_numbers<[1], [0], [0], [1], [0, 0, 1, 1], [], []>} : vector<8x32xf32>, vector<32x32xf32>, vector<8x32xf32> -> vector<8x32xf32>
    %c0_9 = arith.constant 0 : index
    %c0_10 = arith.constant 0 : index
    %10 = vector.load %arg5[%c0_9, %c0_10] : memref<1x32xf32, #tpu.memory_space<vmem>>, vector<1x32xf32>
    %11 = vector.broadcast %10 : vector<1x32xf32> to vector<8x32xf32>
    %12 = arith.addf %9, %11 : vector<8x32xf32>
    %cst_11 = arith.constant 0.000000e+00 : f32
    %13 = vector.broadcast %cst_11 : f32 to vector<8x32xf32>
    %14 = arith.maximumf %12, %13 : vector<8x32xf32>
    %c0_12 = arith.constant 0 : index
    %c0_13 = arith.constant 0 : index
    %15 = vector.load %arg6[%c0_12, %c0_13] : memref<32x128xf32, #tpu.memory_space<vmem>>, vector<32x128xf32>
    %cst_14 = arith.constant dense<0.000000e+00> : vector<8x128xf32>
    %16 = tpu.matmul %14, %15, %cst_14 {dimension_numbers = #tpu.dot_dimension_numbers<[1], [0], [0], [1], [0, 0, 1, 1], [], []>} : vector<8x32xf32>, vector<32x128xf32>, vector<8x128xf32> -> vector<8x128xf32>
    %c0_15 = arith.constant 0 : index
    %c0_16 = arith.constant 0 : index
    %17 = vector.load %arg7[%c0_15, %c0_16] : memref<1x128xf32, #tpu.memory_space<vmem>>, vector<1x128xf32>
    %18 = vector.broadcast %17 : vector<1x128xf32> to vector<8x128xf32>
    %19 = arith.addf %16, %18 : vector<8x128xf32>
    %c0_17 = arith.constant 0 : index
    %c0_18 = arith.constant 0 : index
    %20 = vector.load %arg8[%c0_17, %c0_18] : memref<8x128xf32, #tpu.memory_space<vmem>>, vector<8x128xf32>
    tpu.vector_store %arg8[%c0_17, %c0_18], %19 {strides = array<i32>} : memref<8x128xf32, #tpu.memory_space<vmem>>, vector<8x128xf32>,
    return
  }
  func.func @transform_0(%arg0: i32) -> (i32, i32) {
    %c0_i32 = arith.constant 0 : i32
    %c0_i32_0 = arith.constant 0 : i32
    return %arg0, %c0_i32 : i32, i32
  }
  func.func @transform_1(%arg0: i32) -> (i32, i32) {
    %c0_i32 = arith.constant 0 : i32
    %c0_i32_0 = arith.constant 0 : i32
    %c0_i32_1 = arith.constant 0 : i32
    return %c0_i32, %c0_i32_0 : i32, i32
  }
  func.func @transform_2(%arg0: i32) -> (i32, i32) {
    %c0_i32 = arith.constant 0 : i32
    %c0_i32_0 = arith.constant 0 : i32
    %c0_i32_1 = arith.constant 0 : i32
    return %c0_i32, %c0_i32_0 : i32, i32
  }
  func.func @transform_3(%arg0: i32) -> (i32, i32) {
    %c0_i32 = arith.constant 0 : i32
    %c0_i32_0 = arith.constant 0 : i32
    %c0_i32_1 = arith.constant 0 : i32
    return %c0_i32, %c0_i32_0 : i32, i32
  }
  func.func @transform_4(%arg0: i32) -> (i32, i32) {
    %c0_i32 = arith.constant 0 : i32
    %c0_i32_0 = arith.constant 0 : i32
    %c0_i32_1 = arith.constant 0 : i32
    return %c0_i32, %c0_i32_0 : i32, i32
  }
  func.func @transform_5(%arg0: i32) -> (i32, i32) {
    %c0_i32 = arith.constant 0 : i32
    %c0_i32_0 = arith.constant 0 : i32
    %c0_i32_1 = arith.constant 0 : i32
    return %c0_i32, %c0_i32_0 : i32, i32
  }
  func.func @transform_6(%arg0: i32) -> (i32, i32) {
    %c0_i32 = arith.constant 0 : i32
    %c0_i32_0 = arith.constant 0 : i32
    %c0_i32_1 = arith.constant 0 : i32
    return %c0_i32, %c0_i32_0 : i32, i32
  }
  func.func @transform_7(%arg0: i32) -> (i32, i32) {
    %c0_i32 = arith.constant 0 : i32
    %c0_i32_0 = arith.constant 0 : i32
    return %arg0, %c0_i32 : i32, i32
  }
}

</mosaic_0001>

<bundles_post_ra>
// kernel: qnet_forward.1
= control target key start
LH: loop header
LB: loop body
LE: loop exit
PB: predicated region body
PF: predicated region fallthrough
CT: control target
= control target key end

     0   :  { %12 = vsyncpa [#allocation3], 0  ;;  %s588_s0 = inlined_call_operand.vmem [shape: f32[8,16], index: 0, kind: input, shape index: {}]   ;;  %s589_s1 = inlined_call_operand.hbm [shape: f32[16,32], index: 1, kind: input, shape index: {}]   ;;  %s590_s2 = inlined_call_operand.vmem [shape: f32[1,32], index: 2, kind: input, shape index: {}]   ;;  %s591_s3 = inlined_call_operand.hbm [shape: f32[32,32], index: 3, kind: input, shape index: {}]   ;;  %s592_s4 = inlined_call_operand.vmem [shape: f32[1,32], index: 4, kind: input, shape index: {}]   ;;  %s593_s5 = inlined_call_operand.hbm [shape: f32[32,128], index: 5, kind: input, shape index: {}]   ;;  %s594_s6 = inlined_call_operand.vmem [shape: f32[1,128], index: 6, kind: input, shape index: {}]   ;;  %s595_s7 = inlined_call_operand.vmem [shape: f32[8,128], index: 7, kind: output, shape index: {}]  }
   0x1   :  { %13 = vsyncpa [#allocation5], 0  ;;  %s470_s24 = smov [#allocation4]   ;;  %s471_s26 = smov [#allocation2]  }
   0x2   :  { %s35_s25 = sshll.u32 %s470_s24, 4  ;;  %s21_s27 = sshll.u32 %s471_s26, 4  ;;  %s36_s25 = int_to_ptr.vmem [resolvable:$true] %s35_s25  ;;  %s518_s27 = int_to_ptr.vmem [resolvable:$true] %s21_s27 }
   0x3   :  { %s400_s30 = scalar_lea.hbm %s591_s3, 512 }
   0x4   :  { %p401_p0 = scmp.ne.s32.totalorder %s591_s3, %s400_s30  ;;  %p404_p1 = scmp.lt.u32.totalorder %s400_s30, %s591_s3 }
   0x6   :  { %p406_p2 = pnand %p404_p1, %p401_p0 }
   0x8   :  { %409 = shalt.err (!%p406_p2)
}
   0x9   :  { %s410_s12 = scalar_lea.vmem %s36_s25, 512  ;;  %p415_p4 = scmp.lt.s32.totalorder %s36_s25, %s36_s25 }
   0xa   :  { %p411_p3 = scmp.ne.s32.totalorder %s36_s25, %s410_s12  ;;  %p416_p5 = scmp.lt.s32.totalorder %s410_s12, %s410_s12 }
   0xc   :  { %p417_p6 = por %p416_p5, %p415_p4 }
   0xe   :  { %p418_p7 = pnand %p417_p6, %p411_p3 }
  0x10   :  { %421 = shalt.err (!%p418_p7)
}
  0x11   :  { %s472_s13 = smov 128   ;;  %s473_s14 = smov 8  }
  0x12   :  { %41 = dma.hbm_to_vmem [thread:$0]  %s591_s3, 512, %s36_s25, [#allocation5], %s472_s13, %s472_s13, %s473_s14  }
  0x13   :  { %s422_s19 = scalar_lea.hbm %s589_s1, 256 }
  0x14   :  { %p423_p8 = scmp.ne.s32.totalorder %s589_s1, %s422_s19  ;;  %p426_p9 = scmp.lt.u32.totalorder %s422_s19, %s589_s1 }
  0x16   :  { %p428_p10 = pnand %p426_p9, %p423_p8 }
  0x18   :  { %431 = shalt.err (!%p428_p10)
}
  0x19   :  { %s432_s24 = scalar_lea.vmem %s518_s27, 256  ;;  %p437_p12 = scmp.lt.s32.totalorder %s518_s27, %s518_s27 }
  0x1a   :  { %p433_p11 = scmp.ne.s32.totalorder %s518_s27, %s432_s24  ;;  %p438_p13 = scmp.lt.s32.totalorder %s432_s24, %s432_s24 }
  0x1c   :  { %p439_p0 = por %p438_p13, %p437_p12 }
  0x1e   :  { %p440_p1 = pnand %p439_p0, %p433_p11 }
  0x20   :  { %443 = shalt.err (!%p440_p1)
}
  0x21   :  { %27 = dma.hbm_to_vmem [thread:$0]  %s589_s1, 256, %s518_s27, [#allocation3], %s472_s13, %s472_s13, %s473_s14  }
  0x22   :  { %s474_s26 = smov [#allocation6]   ;;  %s444_s8 = scalar_lea.hbm %s593_s5, 512 }
  0x23   :  { %s49_s28 = sshll.u32 %s474_s26, 4  ;;  %p445_p2 = scmp.ne.s32.totalorder %s593_s5, %s444_s8  ;;  %s50_s28 = int_to_ptr.vmem [resolvable:$true] %s49_s28 }
  0x24   :  { %p448_p3 = scmp.lt.u32.totalorder %s444_s8, %s593_s5 }
  0x26   :  { %p450_p4 = pnand %p448_p3, %p445_p2 }
  0x28   :  { %453 = shalt.err (!%p450_p4)
}
  0x29   :  { %s454_s15 = scalar_lea.vmem %s50_s28, 512  ;;  %p459_p6 = scmp.lt.s32.totalorder %s50_s28, %s50_s28 }
  0x2a   :  { %p455_p5 = scmp.ne.s32.totalorder %s50_s28, %s454_s15  ;;  %p460_p7 = scmp.lt.s32.totalorder %s454_s15, %s454_s15 }
  0x2c   :  { %p461_p8 = por %p460_p7, %p459_p6 }
  0x2e   :  { %p462_p9 = pnand %p461_p8, %p455_p5 }
  0x30   :  { %465 = shalt.err (!%p462_p9)
}
  0x31   :  { %55 = dma.hbm_to_vmem [thread:$0]  %s593_s5, 512, %s50_s28, [#allocation5], %s472_s13, %s472_s13, %s473_s14  }
  0x32   :  { %466 = dma.done.wait [#allocation3], 256  }
  0x33   :  { %467 = vsyncadd [#allocation3], 4294967040 }
  0x34   :  { %468 = dma.done.wait [#allocation5], 1024  }
  0x35   :  { %469 = vsyncadd [#allocation5], 4294966272  ;;  %v475_v0 = vmov 0.0|0.0   ;;  %vm476_vm0 = vmmov 0   ;;  %v477_v1 = vmov 0.0   ;;  %v68_v2 = vld [vmem:[#allocation2] sm:$0xff] }
  0x36   :  { %377 = vmatprep.subr.bf16.mxu0 %v475_v0  ;;  %352 = vmatprep.mubr.msk.f32.mxu0 %vm476_vm0, %v477_v1  ;;  %v69_v3 = vld [vmem:[#allocation2 + $0x8] sm:$0xff]  ;;  %v152_v5 = vld [vmem:[#allocation4] sm:$0xff]  ;;  %v153_v6 = vld [vmem:[#allocation4 + $0x8] sm:$0xff]  ;;  %vm77_vm1 = vcmask 130048   ;;  %vm163_vm2 = vcmask 261120  }
  0x37   :  { %380 = vmatprep.subr.bf16.mxu1 %v475_v0  ;;  %363 = vmatprep.mubr.msk.f32.mxu1 %vm476_vm0, %v477_v1  ;;  %v378_v4 = vpack.c.bf16 %v69_v3, %v68_v2  ;;  %v381_v7 = vpack.c.bf16 %v153_v6, %v152_v5  ;;  %v67_v8 = vld [vmem:[%s588_s0] sm:$0xff]  ;;  %v155_v10 = vld [vmem:[#allocation4 + $0x18] sm:$0xff]  ;;  %v238_v12 = vld [vmem:[#allocation6] sm:$0xff] }
  0x38   :  { %v154_v9 = vld [vmem:[#allocation4 + $0x10] sm:$0xff]  ;;  %v239_v13 = vld [vmem:[#allocation6 + $0x8] sm:$0xff]  ;;  %v241_v21 = vld [vmem:[#allocation6 + $0x18] sm:$0xff] }
  0x39   :  { %379 = vmatpush3.bf16.msra.mxu0 %v378_v4  ;;  %382 = vmatpush3.bf16.msra.mxu1 %v381_v7  ;;  %v384_v11 = vpack.c.bf16 %v155_v10, %v154_v9  ;;  %v387_v14 = vpack.c.bf16 %v239_v13, %v238_v12  ;;  %v329_v15 = vld [vmem:[%s590_s2] ss:$0 sm:$0xff] }
  0x3a   :  { %386 = vmatprep.subr.bf16.mxu0 %v475_v0  ;;  %383 = vmatprep.subr.bf16.mxu1 %v475_v0  ;;  %v240_v20 = vld [vmem:[#allocation6 + $0x10] sm:$0xff] }
  0x3b   :  { %v390_v22 = vpack.c.bf16 %v241_v21, %v240_v20  ;;  %v331_v23 = vld [vmem:[%s592_s4] ss:$0 sm:$0xff] }
  0x3c   :  { %353 = vmatmul.mubr.msk.f32.vlgmr.msra.gmra.mrb[0].mxu0 %vm77_vm1, %v67_v8  ;;  %v333_v28 = vld [vmem:[%s594_s6] ss:$0 sm:$0xff] }
  0x3d   :  { %374 = vmatprep.mubr.msk.f32.mxu0 %vm476_vm0, %v477_v1  ;;  %385 = vmatpush3.bf16.msra.mxu1 %v384_v11 }
  0x3e   :  { %388 = vmatpush3.bf16.msra.mxu0 %v387_v14 }
  0x3f   :  { %389 = vmatprep.subr.bf16.mxu0 %v475_v0 }
  0x42   :  { %391 = vmatpush3.bf16.msra.mxu0 %v390_v22 }
 0x10f   :  { %v147_v16 = vpop.f32.mrb[0].mxu0 }
 0x110   :  { %v148_v17 = vadd.f32 %v329_v15, %v147_v16  ;;  %v354_v18 = vpop.f32.mrb[1].mxu0 }
 0x112   :  { %v151_v19 = vmax.f32 %v148_v17, 0.0 }
 0x114   :  { %364 = vmatmul.mubr.msk.f32.vlgmr.msra.gmra.mrb[0].mxu1 %vm163_vm2, %v151_v19 }
 0x1e7   :  { %v233_v24 = vpop.f32.mrb[0].mxu1 }
 0x1e8   :  { %v234_v25 = vadd.f32 %v331_v23, %v233_v24  ;;  %v365_v26 = vpop.f32.mrb[1].mxu1 }
 0x1ea   :  { %v237_v27 = vmax.f32 %v234_v25, 0.0 }
 0x1ec   :  { %375 = vmatmul.mubr.msk.f32.vlgmr.msra.gmra.mrb[2].mxu0 %vm163_vm2, %v237_v27 }
 0x2bf   :  { %v318_v29 = vpop.f32.mrb[2].mxu0 }
 0x2c0   :  { %v319_v30 = vadd.f32 %v333_v28, %v318_v29  ;;  %v376_v31 = vpop.f32.mrb[3].mxu0 }
 0x2c2   :  { %322 = vst [vmem:[%s595_s7] sm:$0xff] %v319_v30 }
 0x2c3   :  { %327 = vsyncpa [#allocation3], 1 }
 0x2c4   :  { %328 = vsyncpa [#allocation5], 1 }

</bundles_post_ra>
